<compile_context>
chip_gen: v6e
topology: v6e:2x2x1
jax: 0.10.0
libtpu: 0.0.40
codegen_flags: <defaults>
</compile_context>

<pallas_src>
import functools

import jax
import jax.numpy as jnp
from jax.experimental import pallas as pl
from jax.experimental.pallas import tpu as pltpu


# ----------------------------------------------------------------------------
# Single fused Pallas kernel: conv(3x3, pad 1) + bias + ReLU -> flatten (NCHW
# order) -> GEMM + bias + ReLU.  All operands are full-array VMEM blocks.
#
#   patches_T : (Cin*KH*KW, N*H*W)   bf16  im2col'd input; rows ordered
#                                          (ci, kh, kw), columns (n, h, w)
#   conv_wT   : (Cout, Cin*KH*KW)    bf16  OIHW weight flattened to match rows
#   conv_b    : (Cout, 1)            f32
#   fc_w      : (Cout*H*W, Classes)  bf16  original NCHW-flatten row order
#   fc_b      : (1, Classes)         f32
#   out       : (N, Classes)         f32
# ----------------------------------------------------------------------------
def _fused_graph_kernel(pT_ref, wcT_ref, cb_ref, fcw_ref, fcb_ref, o_ref, *,
                        n_batch, n_spatial, n_cout):
    # Conv as one MXU matmul, transposed so the tiny Cout dim sits in sublanes
    # and the large N*H*W dim is lane-dense: (Cout, K) @ (K, N*H*W).
    act = jnp.dot(wcT_ref[...], pT_ref[...],
                  preferred_element_type=jnp.float32)            # (Cout, N*S) f32
    act = jnp.maximum(act + cb_ref[...], 0.0)                    # bias + ReLU

    # Flatten to (N, Cout*S) in NCHW order using static slices + lane concats
    # (an explicit, Mosaic-friendly relayout; avoids jnp.reshape across lanes).
    rows = []
    for n in range(n_batch):
        rows.append(jnp.concatenate(
            [act[c:c + 1, n * n_spatial:(n + 1) * n_spatial]
             for c in range(n_cout)], axis=1))                   # (1, Cout*S)
    flat = jnp.concatenate(rows, axis=0).astype(jnp.bfloat16)    # (N, Cout*S)

    # FC: single MXU matmul with K = Cout*H*W, f32 accumulate, bias + ReLU.
    logits = jnp.dot(flat, fcw_ref[...], preferred_element_type=jnp.float32)
    o_ref[...] = jnp.maximum(logits + fcb_ref[...], 0.0)


def _fused_forward_impl(x, conv_wT, conv_b2, fc_w, fc_b2, *, kh, kw):
    """x: (N, Cin, H, W) f32 NCHW.  Returns (N, Classes) f32 logits."""
    n, cin, h, w = x.shape
    cout = conv_wT.shape[0]
    classes = fc_w.shape[1]

    # im2col in the (jit-fused) wrapper: transposed patch matrix (K, N*H*W)
    # with rows ordered (ci, kh, kw) and columns (n, h, w).
    xb = x.astype(jnp.bfloat16)
    xp = jnp.pad(xb, ((0, 0), (0, 0), (kh // 2, kh // 2), (kw // 2, kw // 2)))
    taps = jnp.stack([xp[:, :, i:i + h, j:j + w]
                      for i in range(kh) for j in range(kw)], axis=2)
    patches_T = (taps.transpose(1, 2, 0, 3, 4)
                 .reshape(cin * kh * kw, n * h * w))             # bf16

    kernel = functools.partial(_fused_graph_kernel,
                               n_batch=n, n_spatial=h * w, n_cout=cout)

    return pl.pallas_call(
        kernel,
        out_shape=jax.ShapeDtypeStruct((n, classes), jnp.float32),
        grid=(1,),
        in_specs=[
            pl.BlockSpec(patches_T.shape, lambda i: (0, 0)),
            pl.BlockSpec(conv_wT.shape, lambda i: (0, 0)),
            pl.BlockSpec(conv_b2.shape, lambda i: (0, 0)),
            pl.BlockSpec(fc_w.shape, lambda i: (0, 0)),
            pl.BlockSpec(fc_b2.shape, lambda i: (0, 0)),
        ],
        out_specs=pl.BlockSpec((n, classes), lambda i: (0, 0)),
        compiler_params=pltpu.CompilerParams(
            dimension_semantics=("arbitrary",),
            vmem_limit_bytes=32 * 1024 * 1024,   # safe headroom on v7x's 64 MiB
        ),
    )(patches_T, conv_wT, conv_b2, fc_w, fc_b2)


# ----------------------------------------------------------------------------
# GraphModule-style interpreter (mirrors the PyTorch forward() semantics).
# ----------------------------------------------------------------------------
class PallasGraphModule:
    def __init__(self):
        self._params = {}
        self._nomove = set()
        self._compute = []

    def forward(self):
        output = None
        for func, out, args in self._compute:
            output = func(*(self._params.get(arg, arg) for arg in args))
            if isinstance(output, list):
                for o, oname in zip(output, out):
                    self._params[oname] = o
            else:
                self._params[out] = output
        return output


def build_module(x, conv_w, conv_b, fc_w, fc_b):
    cout, cin, kh, kw = conv_w.shape
    classes = fc_w.shape[1]

    # ---- one-time static weight prep (hoisted out of the per-forward path) --
    conv_wT = conv_w.reshape(cout, cin * kh * kw).astype(jnp.bfloat16)
    conv_b2 = conv_b.reshape(cout, 1).astype(jnp.float32)
    fc_w_bf = fc_w.astype(jnp.bfloat16)          # original NCHW-flatten order
    fc_b2 = fc_b.reshape(1, classes).astype(jnp.float32)

    # Whole per-forward path (im2col glue + fused pallas_call) as one jit.
    fused_fwd = jax.jit(functools.partial(_fused_forward_impl, kh=kh, kw=kw))

    m = PallasGraphModule()
    m._params.update({
        "input": x, "conv_wT": conv_wT, "conv_b": conv_b2,
        "fc_w": fc_w_bf, "fc_b": fc_b2,
    })
    # TODO(synk): dynamic (func, out, args) dispatch has no static Pallas
    # equivalent; the synthesized Conv->ReLU->Flatten->Gemm->ReLU graph is
    # lowered as a single fused node (one pallas_call) per the perf review,
    # so the conv activation never round-trips HBM.
    m._compute = [
        (fused_fwd, "logits", ("input", "conv_wT", "conv_b", "fc_w", "fc_b")),
    ]
    return m


# ----------------------------------------------------------------------------
# Reference (plain JAX, original NCHW graph, same bf16-in / f32-accum policy).
# ----------------------------------------------------------------------------
def reference(x, w1, b1, w2, b2):
    y = jax.lax.conv_general_dilated(
        x.astype(jnp.bfloat16), w1.astype(jnp.bfloat16),
        window_strides=(1, 1), padding=((1, 1), (1, 1)),
        dimension_numbers=("NCHW", "OIHW", "NCHW"),
        preferred_element_type=jnp.float32,
    ) + b1[None, :, None, None]
    y = jnp.maximum(y, 0.0)
    y = y.reshape(y.shape[0], -1)                      # NCHW flatten
    y = jnp.dot(y.astype(jnp.bfloat16), w2.astype(jnp.bfloat16),
                preferred_element_type=jnp.float32) + b2
    return jnp.maximum(y, 0.0)


if __name__ == "__main__":
    key = jax.random.PRNGKey(0)
    k_x, k_w1, k_b1, k_w2, k_b2 = jax.random.split(key, 5)

    N, Cin, H, W = 2, 4, 16, 16
    Cout, KH, KW = 8, 3, 3
    Hidden = Cout * H * W          # 2048
    Classes = 16

    x = jax.random.normal(k_x, (N, Cin, H, W), dtype=jnp.float32)
    conv_w = jax.random.normal(k_w1, (Cout, Cin, KH, KW), dtype=jnp.float32) * 0.1
    conv_b = jax.random.normal(k_b1, (Cout,), dtype=jnp.float32) * 0.1
    fc_w = jax.random.normal(k_w2, (Hidden, Classes), dtype=jnp.float32) * 0.05
    fc_b = jax.random.normal(k_b2, (Classes,), dtype=jnp.float32) * 0.1

    module = build_module(x, conv_w, conv_b, fc_w, fc_b)
    out = module.forward()
    out = jax.block_until_ready(out)

    ref = jax.block_until_ready(reference(x, conv_w, conv_b, fc_w, fc_b))
    assert out.shape == (N, Classes), out.shape
    assert jnp.allclose(out, ref, atol=2e-2, rtol=2e-2), float(
        jnp.max(jnp.abs(out - ref))
    )

    print("KERNEL_OK")
</pallas_src>

<mosaic_0001>
module attributes {stable_mosaic.version = 11 : i64} {
  func.func @_fused_graph_kernel(%arg0: i32, %arg1: memref<36x512xbf16, #tpu.memory_space<vmem>>, %arg2: memref<8x36xbf16, #tpu.memory_space<vmem>>, %arg3: memref<8x1xf32, #tpu.memory_space<vmem>>, %arg4: memref<2048x16xbf16, #tpu.memory_space<vmem>>, %arg5: memref<1x16xf32, #tpu.memory_space<vmem>>, %arg6: memref<2x16xf32, #tpu.memory_space<vmem>>) attributes {dimension_semantics = [#tpu.dimension_semantics<arbitrary>], iteration_bounds = array<i64: 1>, scalar_prefetch = 0 : i64, scratch_operands = 0 : i64, tpu.core_type = #tpu.core_type<tc>, window_params = [{pipeline_mode = #tpu.pipeline_mode<synchronous>, transform_indices = @transform_0, window_bounds = array<i64: 36, 512>}, {pipeline_mode = #tpu.pipeline_mode<synchronous>, transform_indices = @transform_1, window_bounds = array<i64: 8, 36>}, {pipeline_mode = #tpu.pipeline_mode<synchronous>, transform_indices = @transform_2, window_bounds = array<i64: 8, 1>}, {pipeline_mode = #tpu.pipeline_mode<synchronous>, transform_indices = @transform_3, window_bounds = array<i64: 2048, 16>}, {pipeline_mode = #tpu.pipeline_mode<synchronous>, transform_indices = @transform_4, window_bounds = array<i64: 1, 16>}, {pipeline_mode = #tpu.pipeline_mode<synchronous>, transform_indices = @transform_5, window_bounds = array<i64: 2, 16>}]} {
    %c0 = arith.constant 0 : index
    %c0_0 = arith.constant 0 : index
    %0 = vector.load %arg2[%c0, %c0_0] : memref<8x36xbf16, #tpu.memory_space<vmem>>, vector<8x36xbf16>
    %c0_1 = arith.constant 0 : index
    %c0_2 = arith.constant 0 : index
    %1 = vector.load %arg1[%c0_1, %c0_2] : memref<36x512xbf16, #tpu.memory_space<vmem>>, vector<36x512xbf16>
    %cst = arith.constant dense<0.000000e+00> : vector<8x512xf32>
    %2 = tpu.matmul %0, %1, %cst {dimension_numbers = #tpu.dot_dimension_numbers<[1], [0], [0], [1], [0, 0, 1, 1], [], []>} : vector<8x36xbf16>, vector<36x512xbf16>, vector<8x512xf32> -> vector<8x512xf32>
    %c0_3 = arith.constant 0 : index
    %c0_4 = arith.constant 0 : index
    %3 = vector.load %arg3[%c0_3, %c0_4] : memref<8x1xf32, #tpu.memory_space<vmem>>, vector<8x1xf32>
    %4 = vector.broadcast %3 : vector<8x1xf32> to vector<8x512xf32>
    %5 = arith.addf %2, %4 : vector<8x512xf32>
    %cst_5 = arith.constant 0.000000e+00 : f32
    %6 = vector.broadcast %cst_5 : f32 to vector<8x512xf32>
    %7 = arith.maximumf %5, %6 : vector<8x512xf32>
    %8 = vector.extract_strided_slice %7 {offsets = [0, 0], sizes = [1, 256], strides = [1, 1]} : vector<8x512xf32> to vector<1x256xf32>
    %9 = vector.extract_strided_slice %7 {offsets = [1, 0], sizes = [1, 256], strides = [1, 1]} : vector<8x512xf32> to vector<1x256xf32>
    %10 = vector.extract_strided_slice %7 {offsets = [2, 0], sizes = [1, 256], strides = [1, 1]} : vector<8x512xf32> to vector<1x256xf32>
    %11 = vector.extract_strided_slice %7 {offsets = [3, 0], sizes = [1, 256], strides = [1, 1]} : vector<8x512xf32> to vector<1x256xf32>
    %12 = vector.extract_strided_slice %7 {offsets = [4, 0], sizes = [1, 256], strides = [1, 1]} : vector<8x512xf32> to vector<1x256xf32>
    %13 = vector.extract_strided_slice %7 {offsets = [5, 0], sizes = [1, 256], strides = [1, 1]} : vector<8x512xf32> to vector<1x256xf32>
    %14 = vector.extract_strided_slice %7 {offsets = [6, 0], sizes = [1, 256], strides = [1, 1]} : vector<8x512xf32> to vector<1x256xf32>
    %15 = vector.extract_strided_slice %7 {offsets = [7, 0], sizes = [1, 256], strides = [1, 1]} : vector<8x512xf32> to vector<1x256xf32>
    %16 = tpu.concatenate %8, %9, %10, %11, %12, %13, %14, %15 in 1 : vector<1x256xf32>, vector<1x256xf32>, vector<1x256xf32>, vector<1x256xf32>, vector<1x256xf32>, vector<1x256xf32>, vector<1x256xf32>, vector<1x256xf32> -> vector<1x2048xf32>
    %17 = vector.extract_strided_slice %7 {offsets = [0, 256], sizes = [1, 256], strides = [1, 1]} : vector<8x512xf32> to vector<1x256xf32>
    %18 = vector.extract_strided_slice %7 {offsets = [1, 256], sizes = [1, 256], strides = [1, 1]} : vector<8x512xf32> to vector<1x256xf32>
    %19 = vector.extract_strided_slice %7 {offsets = [2, 256], sizes = [1, 256], strides = [1, 1]} : vector<8x512xf32> to vector<1x256xf32>
    %20 = vector.extract_strided_slice %7 {offsets = [3, 256], sizes = [1, 256], strides = [1, 1]} : vector<8x512xf32> to vector<1x256xf32>
    %21 = vector.extract_strided_slice %7 {offsets = [4, 256], sizes = [1, 256], strides = [1, 1]} : vector<8x512xf32> to vector<1x256xf32>
    %22 = vector.extract_strided_slice %7 {offsets = [5, 256], sizes = [1, 256], strides = [1, 1]} : vector<8x512xf32> to vector<1x256xf32>
    %23 = vector.extract_strided_slice %7 {offsets = [6, 256], sizes = [1, 256], strides = [1, 1]} : vector<8x512xf32> to vector<1x256xf32>
    %24 = vector.extract_strided_slice %7 {offsets = [7, 256], sizes = [1, 256], strides = [1, 1]} : vector<8x512xf32> to vector<1x256xf32>
    %25 = tpu.concatenate %17, %18, %19, %20, %21, %22, %23, %24 in 1 : vector<1x256xf32>, vector<1x256xf32>, vector<1x256xf32>, vector<1x256xf32>, vector<1x256xf32>, vector<1x256xf32>, vector<1x256xf32>, vector<1x256xf32> -> vector<1x2048xf32>
    %26 = tpu.concatenate %16, %25 in 0 : vector<1x2048xf32>, vector<1x2048xf32> -> vector<2x2048xf32>
    %27 = arith.truncf %26 : vector<2x2048xf32> to vector<2x2048xbf16>
    %c0_6 = arith.constant 0 : index
    %c0_7 = arith.constant 0 : index
    %28 = vector.load %arg4[%c0_6, %c0_7] : memref<2048x16xbf16, #tpu.memory_space<vmem>>, vector<2048x16xbf16>
    %cst_8 = arith.constant dense<0.000000e+00> : vector<2x16xf32>
    %29 = tpu.matmul %27, %28, %cst_8 {dimension_numbers = #tpu.dot_dimension_numbers<[1], [0], [0], [1], [0, 0, 1, 1], [], []>} : vector<2x2048xbf16>, vector<2048x16xbf16>, vector<2x16xf32> -> vector<2x16xf32>
    %c0_9 = arith.constant 0 : index
    %c0_10 = arith.constant 0 : index
    %30 = vector.load %arg5[%c0_9, %c0_10] : memref<1x16xf32, #tpu.memory_space<vmem>>, vector<1x16xf32>
    %31 = vector.broadcast %30 : vector<1x16xf32> to vector<2x16xf32>
    %32 = arith.addf %29, %31 : vector<2x16xf32>
    %cst_11 = arith.constant 0.000000e+00 : f32
    %33 = vector.broadcast %cst_11 : f32 to vector<2x16xf32>
    %34 = arith.maximumf %32, %33 : vector<2x16xf32>
    %c0_12 = arith.constant 0 : index
    %c0_13 = arith.constant 0 : index
    %35 = vector.load %arg6[%c0_12, %c0_13] : memref<2x16xf32, #tpu.memory_space<vmem>>, vector<2x16xf32>
    tpu.vector_store %arg6[%c0_12, %c0_13], %34 {strides = array<i32>} : memref<2x16xf32, #tpu.memory_space<vmem>>, vector<2x16xf32>,
    return
  }
  func.func @transform_0(%arg0: i32) -> (i32, i32) {
    %c0_i32 = arith.constant 0 : i32
    %c0_i32_0 = arith.constant 0 : i32
    %c0_i32_1 = arith.constant 0 : i32
    return %c0_i32, %c0_i32_0 : i32, i32
  }
  func.func @transform_1(%arg0: i32) -> (i32, i32) {
    %c0_i32 = arith.constant 0 : i32
    %c0_i32_0 = arith.constant 0 : i32
    %c0_i32_1 = arith.constant 0 : i32
    return %c0_i32, %c0_i32_0 : i32, i32
  }
  func.func @transform_2(%arg0: i32) -> (i32, i32) {
    %c0_i32 = arith.constant 0 : i32
    %c0_i32_0 = arith.constant 0 : i32
    %c0_i32_1 = arith.constant 0 : i32
    return %c0_i32, %c0_i32_0 : i32, i32
  }
  func.func @transform_3(%arg0: i32) -> (i32, i32) {
    %c0_i32 = arith.constant 0 : i32
    %c0_i32_0 = arith.constant 0 : i32
    %c0_i32_1 = arith.constant 0 : i32
    return %c0_i32, %c0_i32_0 : i32, i32
  }
  func.func @transform_4(%arg0: i32) -> (i32, i32) {
    %c0_i32 = arith.constant 0 : i32
    %c0_i32_0 = arith.constant 0 : i32
    %c0_i32_1 = arith.constant 0 : i32
    return %c0_i32, %c0_i32_0 : i32, i32
  }
  func.func @transform_5(%arg0: i32) -> (i32, i32) {
    %c0_i32 = arith.constant 0 : i32
    %c0_i32_0 = arith.constant 0 : i32
    %c0_i32_1 = arith.constant 0 : i32
    return %c0_i32, %c0_i32_0 : i32, i32
  }
}

</mosaic_0001>

<bundles_post_ra>
// kernel: _fused_forward_impl.1
= control target key start
LH: loop header
LB: loop body
LE: loop exit
PB: predicated region body
PF: predicated region fallthrough
CT: control target
= control target key end

     0   :  { %vm93_vm0 = vcmask 1041408   ;;  %v2171_v16 = vmov 0   ;;  %vm89_vm1 = vcmask 293888   ;;  %s2707_s0 = inlined_call_operand.vmem [shape: bf16[36,512], index: 0, kind: input, shape index: {}]   ;;  %s2708_s1 = inlined_call_operand.vmem [shape: bf16[8,36], index: 1, kind: input, shape index: {}]   ;;  %s2709_s2 = inlined_call_operand.vmem [shape: f32[8,1], index: 2, kind: input, shape index: {}]   ;;  %s2710_s3 = inlined_call_operand.vmem [shape: bf16[2048,16], index: 3, kind: input, shape index: {}]   ;;  %s2711_s4 = inlined_call_operand.vmem [shape: f32[1,16], index: 4, kind: input, shape index: {}]   ;;  %s2712_s5 = inlined_call_operand.hbm [shape: f32[2,16], index: 5, kind: output, shape index: {}]  }
   0x1   :  { %v31_v0 = vld [vmem:[%s2707_s0 + $0x40] sm:$0x33]  ;;  %v32_v1 = vld [vmem:[%s2707_s0 + $0x48] sm:$0x33]  ;;  %138 = vmatprep.mubr.bf16.mxu0 %v2171_v16  ;;  %179 = vmatprep.mubr.bf16.mxu1 %v2171_v16  ;;  %v2021_v18 = vld [vmem:[%s2710_s3 + $0x78] sm:$0xff]  }
   0x2   :  { %v1678_v2 = vcombine.high %v31_v0, %v31_v0  ;;  %v1680_v3 = vcombine.high %v32_v1, %v32_v1  ;;  %v1677_v4 = vcombine.low %v31_v0, %v31_v0  ;;  %v1679_v5 = vcombine.low %v32_v1, %v32_v1  ;;  %v2009_v6 = vld [vmem:[%s2707_s0 + $0x24] ss:$16 sps:$4 sm:$0xff]   ;;  %v2011_v7 = vld [vmem:[%s2707_s0 + $0x2c] ss:$16 sps:$4 sm:$0xff]   ;;  %v2013_v8 = vld [vmem:[%s2707_s0 + $0x20] ss:$16 sps:$4 sm:$0xff]   ;;  %2004 = vset.pattern.permute.xlu0 %v2171_v16 }
   0x3   :  { %v2014_v11 = vld [vmem:[%s2707_s0 + $0x28] ss:$16 sps:$4 sm:$0xff]   ;;  %v2015_v12 = vld [vmem:[%s2707_s0 + $0x4] ss:$16 sps:$4 sm:$0xff]   ;;  %v2017_v13 = vld [vmem:[%s2707_s0 + $0xc] ss:$16 sps:$4 sm:$0xff]  }
   0x4   :  { %1681 = vmatprep.subr.msk.bf16.mxu0 %vm93_vm0, %v1678_v2  ;;  %1683 = vmatprep.subr.msk.bf16.mxu1 %vm93_vm0, %v1680_v3  ;;  %v95_v9 = vsel %vm93_vm0, %v1677_v4, 0  ;;  %v101_v10 = vsel %vm93_vm0, %v1679_v5, 0  ;;  %v2019_v14 = vld [vmem:[%s2707_s0] ss:$16 sps:$4 sm:$0xff]   ;;  %v2020_v15 = vld [vmem:[%s2707_s0 + $0x8] ss:$16 sps:$4 sm:$0xff]  }
   0x5   :  { %117 = vmatpush1.bf16.msra.mxu0 %v95_v9  ;;  %158 = vmatpush1.bf16.msra.mxu1 %v101_v10  ;;  %v33_v17 = vld [vmem:[%s2709_s2] sm:$0xff]  ;;  %v2022_v19 = vld [vmem:[%s2710_s3 + $0xf8] sm:$0xff]   ;;  %v2025_v23 = vld [vmem:[%s2710_s3 + $0x70] sm:$0xff]  }
   0x6   :  { %118 = vmatprep.subr.bf16.mxu0 %v2009_v6  ;;  %159 = vmatprep.subr.bf16.mxu1 %v2011_v7  ;;  %v22_v20 = vld [vmem:[%s2708_s1] sm:$0xf]  ;;  %v2023_v21 = vld [vmem:[%s2710_s3 + $0x38] sm:$0xff]   ;;  %v2026_v24 = vld [vmem:[%s2710_s3 + $0xf0] sm:$0xff]  }
   0x7   :  { %36 = vperm.xlu0 %2004, %v33_v17   ;;  %v2024_v22 = vld [vmem:[%s2710_s3 + $0xb8] sm:$0xff]   ;;  %v2027_v25 = vld [vmem:[%s2710_s3 + $0x30] sm:$0xff]   ;;  %v2029_v27 = vld [vmem:[%s2710_s3 + $0x68] sm:$0xff]  }
   0x8   :  { %v2028_v26 = vld [vmem:[%s2710_s3 + $0xb0] sm:$0xff]   ;;  %v2030_v28 = vld [vmem:[%s2710_s3 + $0xe8] sm:$0xff]   ;;  %v2033_v31 = vld [vmem:[%s2710_s3 + $0x60] sm:$0xff]  }
   0x9   :  { %119 = vmatpush1.bf16.msra.mxu0 %v2013_v8  ;;  %160 = vmatpush1.bf16.msra.mxu1 %v2014_v11  ;;  %v2031_v29 = vld [vmem:[%s2710_s3 + $0x28] sm:$0xff]   ;;  %v2034_v32 = vld [vmem:[%s2710_s3 + $0xe0] sm:$0xff]   ;;  %v2037_v35 = vld [vmem:[%s2710_s3 + $0x58] sm:$0xff]  }
   0xa   :  { %120 = vmatprep.subr.bf16.mxu0 %v2015_v12  ;;  %161 = vmatprep.subr.bf16.mxu1 %v2017_v13  ;;  %v2032_v30 = vld [vmem:[%s2710_s3 + $0xa8] sm:$0xff]   ;;  %v2035_v33 = vld [vmem:[%s2710_s3 + $0x20] sm:$0xff]   ;;  %v2038_v36 = vld [vmem:[%s2710_s3 + $0xd8] sm:$0xff]  }
   0xb   :  { %v2036_v34 = vld [vmem:[%s2710_s3 + $0xa0] sm:$0xff]   ;;  %v2039_v37 = vld [vmem:[%s2710_s3 + $0x18] sm:$0xff]   ;;  %v2041_v39 = vld [vmem:[%s2710_s3 + $0x50] sm:$0xff]  }
   0xc   :  { %v2040_v38 = vld [vmem:[%s2710_s3 + $0x98] sm:$0xff]   ;;  %v2042_v40 = vld [vmem:[%s2710_s3 + $0xd0] sm:$0xff]   ;;  %v2045_v43 = vld [vmem:[%s2710_s3 + $0x48] sm:$0xff]  }
   0xd   :  { %121 = vmatpush1.bf16.msra.mxu0 %v2019_v14  ;;  %162 = vmatpush1.bf16.msra.mxu1 %v2020_v15  ;;  %v2043_v41 = vld [vmem:[%s2710_s3 + $0x10] sm:$0xff]   ;;  %v2046_v44 = vld [vmem:[%s2710_s3 + $0xc8] sm:$0xff]   ;;  %v2049_v47 = vld [vmem:[%s2710_s3 + $0x40] sm:$0xff]  }
   0xe   :  { %1826 = vmatprep.subr.bf16.mxu0 %v2021_v18  ;;  %1848 = vmatprep.subr.bf16.mxu1 %v2022_v19  ;;  %v2044_v42 = vld [vmem:[%s2710_s3 + $0x90] sm:$0xff]   ;;  %v2047_v45 = vld [vmem:[%s2710_s3 + $0x8] sm:$0xff]   ;;  %v2050_v48 = vld [vmem:[%s2710_s3 + $0xc0] sm:$0xff]  }
   0xf   :  { %v2048_v46 = vld [vmem:[%s2710_s3 + $0x88] sm:$0xff]   ;;  %v2051_v49 = vld [vmem:[%s2710_s3] sm:$0xff]   ;;  %v2053_v51 = vld [vmem:[%s2710_s3 + $0x178] sm:$0xff]  }
  0x10   :  { %1682 = vmatmul.mubr.msk.bf16.vlgmr.msra.gmra.mxu0 %vm89_vm1, %v22_v20  ;;  %1684 = vmatmul.mubr.msk.bf16.vlgmr.msra.gmra.mxu1 %vm89_vm1, %v22_v20  ;;  %v2052_v50 = vld [vmem:[%s2710_s3 + $0x80] sm:$0xff]   ;;  %v2054_v52 = vld [vmem:[%s2710_s3 + $0x1f8] sm:$0xff]  }
  0x11   :  { %1827 = vmatpush3.bf16.msra.mxu0 %v2023_v21  ;;  %1849 = vmatpush3.bf16.msra.mxu1 %v2024_v22 }
  0x12   :  { %1828 = vmatprep.subr.bf16.mxu0 %v2025_v23  ;;  %1850 = vmatprep.subr.bf16.mxu1 %v2026_v24 }
  0x15   :  { %1829 = vmatpush3.bf16.msra.mxu0 %v2027_v25  ;;  %1851 = vmatpush3.bf16.msra.mxu1 %v2028_v26 }
  0x16   :  { %1830 = vmatprep.subr.bf16.mxu0 %v2029_v27  ;;  %1852 = vmatprep.subr.bf16.mxu1 %v2030_v28 }
  0x19   :  { %1831 = vmatpush3.bf16.msra.mxu0 %v2031_v29  ;;  %1853 = vmatpush3.bf16.msra.mxu1 %v2032_v30 }
  0x1a   :  { %1832 = vmatprep.subr.bf16.mxu0 %v2033_v31  ;;  %1854 = vmatprep.subr.bf16.mxu1 %v2034_v32 }
  0x1d   :  { %1833 = vmatpush3.bf16.msra.mxu0 %v2035_v33  ;;  %1855 = vmatpush3.bf16.msra.mxu1 %v2036_v34 }
  0x1e   :  { %1834 = vmatprep.subr.bf16.mxu0 %v2037_v35  ;;  %1856 = vmatprep.subr.bf16.mxu1 %v2038_v36 }
  0x21   :  { %1835 = vmatpush3.bf16.msra.mxu0 %v2039_v37  ;;  %1857 = vmatpush3.bf16.msra.mxu1 %v2040_v38 }
  0x22   :  { %1836 = vmatprep.subr.bf16.mxu0 %v2041_v39  ;;  %1858 = vmatprep.subr.bf16.mxu1 %v2042_v40 }
  0x25   :  { %1837 = vmatpush3.bf16.msra.mxu0 %v2043_v41  ;;  %1859 = vmatpush3.bf16.msra.mxu1 %v2044_v42 }
  0x26   :  { %1838 = vmatprep.subr.bf16.mxu0 %v2045_v43  ;;  %1860 = vmatprep.subr.bf16.mxu1 %v2046_v44 }
  0x29   :  { %1839 = vmatpush3.bf16.msra.mxu0 %v2047_v45  ;;  %1861 = vmatpush3.bf16.msra.mxu1 %v2048_v46 }
  0x2a   :  { %1840 = vmatprep.subr.bf16.mxu0 %v2049_v47  ;;  %1862 = vmatprep.subr.bf16.mxu1 %v2050_v48 }
  0x2d   :  { %1841 = vmatpush3.bf16.msra.mxu0 %v2051_v49  ;;  %1863 = vmatpush3.bf16.msra.mxu1 %v2052_v50 }
  0x2e   :  { %1870 = vmatprep.subr.bf16.mxu0 %v2053_v51  ;;  %1892 = vmatprep.subr.bf16.mxu1 %v2054_v52 }
  0x2f   :  { %10 = vsyncpa [#allocation3], 0  ;;  %vm268_vm2 = vcmask 1040384   ;;  %v2055_v20 = vld [vmem:[%s2710_s3 + $0x138] sm:$0xff]   ;;  %v2057_v26 = vld [vmem:[%s2710_s3 + $0x170] sm:$0xff]   ;;  %vm1653_vm3 = vcmask 123904  }
  0x30   :  { %v2056_v21 = vld [vmem:[%s2710_s3 + $0x1b8] sm:$0xff]   ;;  %v2058_v27 = vld [vmem:[%s2710_s3 + $0x1f0] sm:$0xff]   ;;  %v2061_v37 = vld [vmem:[%s2710_s3 + $0x168] sm:$0xff]  }
  0x31   :  { %v2059_v32 = vld [vmem:[%s2710_s3 + $0x130] sm:$0xff]   ;;  %v2062_v38 = vld [vmem:[%s2710_s3 + $0x1e8] sm:$0xff]   ;;  %v2065_v51 = vld [vmem:[%s2710_s3 + $0x160] sm:$0xff]  }
  0x32   :  { %v2060_v33 = vld [vmem:[%s2710_s3 + $0x1b0] sm:$0xff]   ;;  %v2063_v46 = vld [vmem:[%s2710_s3 + $0x128] sm:$0xff]   ;;  %v2066_v52 = vld [vmem:[%s2710_s3 + $0x1e0] sm:$0xff]  }
  0x33   :  { %v2064_v47 = vld [vmem:[%s2710_s3 + $0x1a8] sm:$0xff]  }
  0x82   :  { %v37_v53 = vpop.permute.xlu0 %36 }
  0xd0   :  { %v140_v54 = vpop.f32.mrf.mxu0  ;;  %v181_v55 = vpop.f32.mrf.mxu1 }
  0xd1   :  { %v141_v56 = vadd.f32 %v140_v54, %v37_v53  ;;  %v182_v57 = vadd.f32 %v181_v55, %v37_v53 }
  0xd2   :  { %v142_v58 = vpop.f32.mrf.mxu0  ;;  %v183_v59 = vpop.f32.mrf.mxu1 }
  0xd3   :  { %v2341_v60 = vmax.f32 %v141_v56, 0.0  ;;  %v2343_v61 = vmax.f32 %v182_v57, 0.0  ;;  %v143_v62 = vadd.f32 %v142_v58, %v37_v53  ;;  %v184_v63 = vadd.f32 %v183_v59, %v37_v53  ;;  %v2067_v56 = vld [vmem:[%s2710_s3 + $0x120] sm:$0xff]   ;;  %v2069_v58 = vld [vmem:[%s2710_s3 + $0x158] sm:$0xff]  }
  0xd4   :  { %v144_v0 = vpop.f32.mrf.mxu0  ;;  %v185_v1 = vpop.f32.mrf.mxu1  ;;  %v2068_v57 = vld [vmem:[%s2710_s3 + $0x1a0] sm:$0xff]   ;;  %v2070_v59 = vld [vmem:[%s2710_s3 + $0x1d8] sm:$0xff]  }
  0xd5   :  { %v2345_v2 = vmax.f32 %v143_v62, 0.0  ;;  %v2347_v3 = vmax.f32 %v184_v63, 0.0  ;;  %v236_v4 = vrot.slane %v2343_v61, 7  ;;  %v194_v5 = vrot.slane %v2341_v60, 1  ;;  %v2071_v62 = vld [vmem:[%s2710_s3 + $0x118] sm:$0xff]   ;;  %v2073_v0 = vld [vmem:[%s2710_s3 + $0x150] sm:$0xff]  }
  0xd6   :  { %v145_v6 = vpop.f32.mrf.mxu0  ;;  %v186_v7 = vpop.f32.mrf.mxu1  ;;  %v206_v30 = vrot.slane %v2341_v60, 4  ;;  %v1691_v31 = vrot.slane %v2343_v61, 11  ;;  %v210_v34 = vrot.slane %v2341_v60, 5  ;;  %v1693_v35 = vrot.slane %v2343_v61, 12  ;;  %v2072_v63 = vld [vmem:[%s2710_s3 + $0x198] sm:$0xff]   ;;  %v2074_v1 = vld [vmem:[%s2710_s3 + $0x1d0] sm:$0xff]  }
  0xd7   :  { %v237_v8 = vrot.slane %v2347_v3, 7  ;;  %v195_v9 = vrot.slane %v2345_v2, 1  ;;  %v269_v10 = vsel %vm268_vm2, %v2341_v60, %v236_v4  ;;  %v271_v11 = vsel %vm268_vm2, %v194_v5, %v2343_v61  ;;  %v2076_v5 = vld [vmem:[%s2710_s3 + $0x190] sm:$0xff]   ;;  %v2077_v6 = vld [vmem:[%s2710_s3 + $0x148] sm:$0xff]  }
  0xd8   :  { %v199_v12 = vrot.slane %v2345_v2, 2  ;;  %v1688_v13 = vrot.slane %v2347_v3, 9  ;;  %v203_v16 = vrot.slane %v2345_v2, 3  ;;  %v1690_v17 = vrot.slane %v2347_v3, 10  ;;  %v2078_v7 = vld [vmem:[%s2710_s3 + $0x1c8] sm:$0xff]  }
  0xd9   :  { %v270_v14 = vsel %vm268_vm2, %v2345_v2, %v237_v8  ;;  %v272_v15 = vsel %vm268_vm2, %v195_v9, %v2347_v3  ;;  %v285_v23 = vpack.c.bf16 %v269_v10, %v269_v10  ;;  %v287_v24 = vpack.c.bf16 %v271_v11, %v271_v11  ;;  %v2080_v9 = vld [vmem:[%s2710_s3 + $0x188] sm:$0xff]   ;;  %v2081_v10 = vld [vmem:[%s2710_s3 + $0x140] sm:$0xff]  }
  0xda   :  { %v286_v18 = vpack.c.bf16 %v270_v14, %v270_v14  ;;  %v288_v19 = vpack.c.bf16 %v272_v15, %v272_v15  ;;  %v274_v22 = vsel %vm268_vm2, %v199_v12, %v1688_v13  ;;  %v276_v25 = vsel %vm268_vm2, %v203_v16, %v1690_v17  ;;  %v2082_v11 = vld [vmem:[%s2710_s3 + $0x1c0] sm:$0xff]  }
  0xdb   :  { %v290_v28 = vpack.c.bf16 %v274_v22, %v274_v22  ;;  %v292_v29 = vpack.c.bf16 %v276_v25, %v276_v25  ;;  %v215_v36 = vrot.slane %v2345_v2, 6  ;;  %v2397_v39 = vsel %vm268_vm2, %v206_v30, %v1691_v31  ;;  %v2090_v30 = vld [vmem:[%s2710_s3 + $0x2f0] sm:$0xff]  }
  0xdc   :  { %1364 = vmatprep.mubr.bf16.mxu0 %v286_v18  ;;  %1404 = vmatprep.mubr.bf16.mxu1 %v288_v19  ;;  %v1696_v40 = vrot.slane %v2347_v3, 13  ;;  %v2401_v41 = vsel %vm268_vm2, %v210_v34, %v1693_v35  ;;  %v219_v43 = vrot.slane %v2345_v2, 7  ;;  %v251_v44 = vrot.slane %v237_v8, 7  ;;  %v2079_v8 = vld [vmem:[%s2710_s3 + $0x108] sm:$0xff]   ;;  %v2083_v18 = vld [vmem:[%s2710_s3 + $0x100] sm:$0xff]  }
  0xdd   :  { %1365 = vmatmul.mubr.bf16.vlgmr.msra.gmra.mxu0 %v285_v23  ;;  %1405 = vmatmul.mubr.bf16.vlgmr.msra.gmra.mxu1 %v287_v24  ;;  %v214_v45 = vrot.slane %v2341_v60, 6  ;;  %v1695_v48 = vrot.slane %v2343_v61, 13  ;;  %v218_v49 = vrot.slane %v2341_v60, 7  ;;  %v250_v50 = vrot.slane %v236_v4, 7  ;;  %v2075_v4 = vld [vmem:[%s2710_s3 + $0x110] sm:$0xff]   ;;  %v2084_v19 = vld [vmem:[%s2710_s3 + $0x180] sm:$0xff]  }
  0xde   :  { %1871 = vmatpush3.bf16.msra.mxu0 %v2055_v20  ;;  %1893 = vmatpush3.bf16.msra.mxu1 %v2056_v21  ;;  %v2404_v42 = vsel %vm268_vm2, %v215_v36, %v1696_v40  ;;  %v2423_v53 = vsel %vm268_vm2, %v219_v43, %v251_v44  ;;  %v198_v12 = vrot.slane %v2341_v60, 2  ;;  %v1687_v13 = vrot.slane %v2343_v61, 9  ;;  %v2086_v21 = vld [vmem:[%s2710_s3 + $0x2f8] sm:$0xff]   ;;  %v2093_v34 = vld [vmem:[%s2710_s3 + $0x268] sm:$0xff]   ;;  %v2098_v40 = vld [vmem:[%s2710_s3 + $0x2e0] sm:$0xff]  }
  0xdf   :  { %1444 = vmatprep.mubr.bf16.mxu0 %v290_v28  ;;  %1484 = vmatprep.mubr.bf16.mxu1 %v292_v29  ;;  %v2426_v54 = vsel %vm268_vm2, %v214_v45, %v1695_v48  ;;  %v2429_v55 = vsel %vm268_vm2, %v218_v49, %v250_v50  ;;  %v202_v14 = vrot.slane %v2341_v60, 3  ;;  %v1689_v15 = vrot.slane %v2343_v61, 10  ;;  %v2085_v61 = vld [vmem:[%s2710_s3 + $0x278] sm:$0xff]   ;;  %v2089_v29 = vld [vmem:[%s2710_s3 + $0x270] sm:$0xff]   ;;  %v2094_v35 = vld [vmem:[%s2710_s3 + $0x2e8] sm:$0xff]  }
  0xe0   :  { %1872 = vmatprep.subr.bf16.mxu0 %v2057_v26  ;;  %1894 = vmatprep.subr.bf16.mxu1 %v2058_v27  ;;  %v207_v16 = vrot.slane %v2345_v2, 4  ;;  %v1692_v17 = vrot.slane %v2347_v3, 11  ;;  %v211_v20 = vrot.slane %v2345_v2, 5  ;;  %v1694_v60 = vrot.slane %v2347_v3, 12  ;;  %v2087_v2 = vld [vmem:[%s2710_s3 + $0x238] sm:$0xff]   ;;  %v2095_v36 = vld [vmem:[%s2710_s3 + $0x228] sm:$0xff]  }
  0xe1   :  { %v273_v22 = vsel %vm268_vm2, %v198_v12, %v1687_v13  ;;  %v275_v23 = vsel %vm268_vm2, %v202_v14, %v1689_v15  ;;  %v2088_v27 = vld [vmem:[%s2710_s3 + $0x2b8] sm:$0xff]   ;;  %v2099_v43 = vld [vmem:[%s2710_s3 + $0x220] sm:$0xff]   ;;  %v2105_v49 = vld [vmem:[%s2710_s3 + $0x250] sm:$0xff]   ;;  %v300_v12 = vpack.c.bf16 %v2423_v53, %v2423_v53 }
  0xe2   :  { %1873 = vmatpush3.bf16.msra.mxu0 %v2059_v32  ;;  %1895 = vmatpush3.bf16.msra.mxu1 %v2060_v33  ;;  %v278_v24 = vsel %vm268_vm2, %v207_v16, %v1692_v17  ;;  %v280_v3 = vsel %vm268_vm2, %v211_v20, %v1694_v60  ;;  %v289_v25 = vpack.c.bf16 %v273_v22, %v273_v22  ;;  %v2091_v32 = vld [vmem:[%s2710_s3 + $0x230] sm:$0xff]   ;;  %v2100_v44 = vld [vmem:[%s2710_s3 + $0x2a0] sm:$0xff]   ;;  %v2101_v45 = vld [vmem:[%s2710_s3 + $0x258] sm:$0xff]  }
  0xe3   :  { %1874 = vmatprep.subr.bf16.mxu0 %v2061_v37  ;;  %1896 = vmatprep.subr.bf16.mxu1 %v2062_v38  ;;  %v291_v26 = vpack.c.bf16 %v275_v23, %v275_v23  ;;  %v294_v28 = vpack.c.bf16 %v278_v24, %v278_v24  ;;  %v296_v31 = vpack.c.bf16 %v280_v3, %v280_v3  ;;  %v2092_v33 = vld [vmem:[%s2710_s3 + $0x2b0] sm:$0xff]   ;;  %v2096_v37 = vld [vmem:[%s2710_s3 + $0x2a8] sm:$0xff]   ;;  %v2097_v38 = vld [vmem:[%s2710_s3 + $0x260] sm:$0xff]  }
  0xe4   :  { %v2104_v48 = vld [vmem:[%s2710_s3 + $0x298] sm:$0xff]   ;;  %v2106_v50 = vld [vmem:[%s2710_s3 + $0x2d0] sm:$0xff]   ;;  %v2126_v53 = vld [vmem:[%s2710_s3 + $0x3e8] sm:$0xff]  }
  0xe5   :  { %v2124_v13 = vld [vmem:[%s2710_s3 + $0x3b0] sm:$0xff]   ;;  %v2127_v14 = vld [vmem:[%s2710_s3 + $0x328] sm:$0xff]   ;;  %v2129_v16 = vld [vmem:[%s2710_s3 + $0x360] sm:$0xff]  }
  0xe6   :  { %1875 = vmatpush3.bf16.msra.mxu0 %v2063_v46  ;;  %1897 = vmatpush3.bf16.msra.mxu1 %v2064_v47  ;;  %v2102_v46 = vld [vmem:[%s2710_s3 + $0x2d8] sm:$0xff]   ;;  %v2128_v15 = vld [vmem:[%s2710_s3 + $0x3a8] sm:$0xff]   ;;  %v2130_v17 = vld [vmem:[%s2710_s3 + $0x3e0] sm:$0xff]  }
  0xe7   :  { %1876 = vmatprep.subr.bf16.mxu0 %v2065_v51  ;;  %1898 = vmatprep.subr.bf16.mxu1 %v2066_v52  ;;  %v2103_v47 = vld [vmem:[%s2710_s3 + $0x218] sm:$0xff]   ;;  %v2107_v51 = vld [vmem:[%s2710_s3 + $0x210] sm:$0xff]   ;;  %v2141_v3 = vld [vmem:[%s2710_s3 + $0x348] sm:$0xff]  }
  0xe8   :  { %v2108_v52 = vld [vmem:[%s2710_s3 + $0x290] sm:$0xff]   ;;  %v2133_v20 = vld [vmem:[%s2710_s3 + $0x358] sm:$0xff]  }
  0xe9   :  { %v2134_v60 = vld [vmem:[%s2710_s3 + $0x3d8] sm:$0xff]   ;;  %v2137_v22 = vld [vmem:[%s2710_s3 + $0x350] sm:$0xff]  }
  0xea   :  { %1877 = vmatpush3.bf16.msra.mxu0 %v2067_v56  ;;  %1899 = vmatpush3.bf16.msra.mxu1 %v2068_v57  ;;  %v2109_v56 = vld [vmem:[%s2710_s3 + $0x248] sm:$0xff]   ;;  %v2138_v23 = vld [vmem:[%s2710_s3 + $0x3d0] sm:$0xff]  }
  0xeb   :  { %1878 = vmatprep.subr.bf16.mxu0 %v2069_v58  ;;  %1900 = vmatprep.subr.bf16.mxu1 %v2070_v59  ;;  %v2110_v57 = vld [vmem:[%s2710_s3 + $0x2c8] sm:$0xff]   ;;  %v2139_v24 = vld [vmem:[%s2710_s3 + $0x310] sm:$0xff]  }
  0xec   :  { %v2111_v58 = vld [vmem:[%s2710_s3 + $0x208] sm:$0xff]  }
  0xed   :  { %v2112_v59 = vld [vmem:[%s2710_s3 + $0x288] sm:$0xff]  }
  0xee   :  { %1879 = vmatpush3.bf16.msra.mxu0 %v2071_v62  ;;  %1901 = vmatpush3.bf16.msra.mxu1 %v2072_v63  ;;  %v2113_v62 = vld [vmem:[%s2710_s3 + $0x240] sm:$0xff]  }
  0xef   :  { %1880 = vmatprep.subr.bf16.mxu0 %v2073_v0  ;;  %1902 = vmatprep.subr.bf16.mxu1 %v2074_v1  ;;  %v2114_v63 = vld [vmem:[%s2710_s3 + $0x2c0] sm:$0xff]  }
  0xf0   :  { %v2115_v0 = vld [vmem:[%s2710_s3 + $0x200] sm:$0xff]  }
  0xf1   :  { %v2116_v1 = vld [vmem:[%s2710_s3 + $0x280] sm:$0xff]  }
  0xf2   :  { %1881 = vmatpush3.bf16.msra.mxu0 %v2075_v4  ;;  %1903 = vmatpush3.bf16.msra.mxu1 %v2076_v5  ;;  %v2117_v4 = vld [vmem:[%s2710_s3 + $0x378] sm:$0xff]  }
  0xf3   :  { %1882 = vmatprep.subr.bf16.mxu0 %v2077_v6  ;;  %1904 = vmatprep.subr.bf16.mxu1 %v2078_v7  ;;  %v2118_v5 = vld [vmem:[%s2710_s3 + $0x3f8] sm:$0xff]   ;;  %v293_v7 = vpack.c.bf16 %v2397_v39, %v2397_v39  ;;  %v2122_v39 = vld [vmem:[%s2710_s3 + $0x3f0] sm:$0xff]  }
  0xf4   :  { %v2119_v6 = vld [vmem:[%s2710_s3 + $0x338] sm:$0xff]  }
  0xf6   :  { %1883 = vmatpush3.bf16.msra.mxu0 %v2079_v8  ;;  %1905 = vmatpush3.bf16.msra.mxu1 %v2080_v9  ;;  %v2120_v8 = vld [vmem:[%s2710_s3 + $0x3b8] sm:$0xff]   ;;  %v295_v9 = vpack.c.bf16 %v2401_v41, %v2401_v41  ;;  %v2123_v41 = vld [vmem:[%s2710_s3 + $0x330] sm:$0xff]  }
  0xf7   :  { %1884 = vmatprep.subr.bf16.mxu0 %v2081_v10  ;;  %1906 = vmatprep.subr.bf16.mxu1 %v2082_v11  ;;  %v2121_v10 = vld [vmem:[%s2710_s3 + $0x370] sm:$0xff]   ;;  %v298_v11 = vpack.c.bf16 %v2404_v42, %v2404_v42  ;;  %v2125_v42 = vld [vmem:[%s2710_s3 + $0x368] sm:$0xff]  }
  0xfa   :  { %1885 = vmatpush3.bf16.msra.mxu0 %v2083_v18  ;;  %1907 = vmatpush3.bf16.msra.mxu1 %v2084_v19  ;;  %v2131_v18 = vld [vmem:[%s2710_s3 + $0x320] sm:$0xff]  }
  0xfb   :  { %1914 = vmatprep.subr.bf16.mxu0 %v2085_v61  ;;  %1936 = vmatprep.subr.bf16.mxu1 %v2086_v21  ;;  %v2132_v19 = vld [vmem:[%s2710_s3 + $0x3a0] sm:$0xff]   ;;  %v2135_v61 = vld [vmem:[%s2710_s3 + $0x318] sm:$0xff]  }
  0xfc   :  { %v2136_v21 = vld [vmem:[%s2710_s3 + $0x398] sm:$0xff]  }
  0xfd   :  { %1445 = vmatmul.mubr.bf16.vlgmr.msra.gmra.mxu0 %v289_v25  ;;  %1485 = vmatmul.mubr.bf16.vlgmr.msra.gmra.mxu1 %v291_v26  ;;  %v2142_v25 = vld [vmem:[%s2710_s3 + $0x3c8] sm:$0xff]  }
  0xfe   :  { %1915 = vmatpush3.bf16.msra.mxu0 %v2087_v2  ;;  %1524 = vmatprep.mubr.bf16.mxu0 %v294_v28  ;;  %v2140_v2 = vld [vmem:[%s2710_s3 + $0x390] sm:$0xff]   ;;  %v2143_v26 = vld [vmem:[%s2710_s3 + $0x308] sm:$0xff]   ;;  %v2145_v28 = vld [vmem:[%s2710_s3 + $0x340] sm:$0xff]  }
  0xff   :  { %1937 = vmatpush3.bf16.msra.mxu1 %v2088_v27  ;;  %1564 = vmatprep.mubr.bf16.mxu1 %v296_v31  ;;  %v2144_v27 = vld [vmem:[%s2710_s3 + $0x388] sm:$0xff]   ;;  %v2148_v31 = vld [vmem:[%s2710_s3 + $0x380] sm:$0xff]  }
 0x100   :  { %1916 = vmatprep.subr.bf16.mxu0 %v2089_v29  ;;  %1938 = vmatprep.subr.bf16.mxu1 %v2090_v30  ;;  %v2146_v29 = vld [vmem:[%s2710_s3 + $0x3c0] sm:$0xff]  }
 0x101   :  { %v2147_v30 = vld [vmem:[%s2710_s3 + $0x300] sm:$0xff]   ;;  %s2172_s3 = smov [#allocation2]  }
 0x102   :  { %1917 = vmatpush3.bf16.msra.mxu0 %v2091_v32  ;;  %v297_v32 = vpack.c.bf16 %v2426_v54, %v2426_v54 }
 0x103   :  { %1939 = vmatpush3.bf16.msra.mxu1 %v2092_v33  ;;  %1918 = vmatprep.subr.bf16.mxu0 %v2093_v34  ;;  %v299_v33 = vpack.c.bf16 %v2429_v55, %v2429_v55 }
 0x104   :  { %1940 = vmatprep.subr.bf16.mxu1 %v2094_v35 }
 0x106   :  { %1919 = vmatpush3.bf16.msra.mxu0 %v2095_v36  ;;  %v1697_v36 = vld [vmem:[%s2711_s4] ss:$0 sm:$0xff]  ;;  %s1661_s4 = sshll.u32 %s2172_s3, 4  ;;  %s1662_s4 = int_to_ptr.vmem [resolvable:$true] %s1661_s4 }
 0x107   :  { %1941 = vmatpush3.bf16.msra.mxu1 %v2096_v37  ;;  %1920 = vmatprep.subr.bf16.mxu0 %v2097_v38  ;;  %s2149_s2 = scalar_lea.vmem %s1662_s4, 32  ;;  %p2154_p1 = scmp.lt.s32.totalorder %s1662_s4, %s1662_s4 }
 0x108   :  { %1942 = vmatprep.subr.bf16.mxu1 %v2098_v40  ;;  %p2150_p0 = scmp.ne.s32.totalorder %s1662_s4, %s2149_s2  ;;  %p2155_p2 = scmp.lt.s32.totalorder %s2149_s2, %s2149_s2 }
 0x10a   :  { %1921 = vmatpush3.bf16.msra.mxu0 %v2099_v43  ;;  %p2156_p3 = por %p2155_p2, %p2154_p1 }
 0x10b   :  { %1943 = vmatpush3.bf16.msra.mxu1 %v2100_v44  ;;  %1922 = vmatprep.subr.bf16.mxu0 %v2101_v45 }
 0x10c   :  { %1944 = vmatprep.subr.bf16.mxu1 %v2102_v46  ;;  %p2157_p4 = pnand %p2156_p3, %p2150_p0 }
 0x10e   :  { %1923 = vmatpush3.bf16.msra.mxu0 %v2103_v47 }
 0x10f   :  { %1945 = vmatpush3.bf16.msra.mxu1 %v2104_v48  ;;  %1924 = vmatprep.subr.bf16.mxu0 %v2105_v49 }
 0x110   :  { %1946 = vmatprep.subr.bf16.mxu1 %v2106_v50 }
 0x112   :  { %1925 = vmatpush3.bf16.msra.mxu0 %v2107_v51 }
 0x113   :  { %1947 = vmatpush3.bf16.msra.mxu1 %v2108_v52  ;;  %1926 = vmatprep.subr.bf16.mxu0 %v2109_v56 }
 0x114   :  { %1948 = vmatprep.subr.bf16.mxu1 %v2110_v57 }
 0x116   :  { %1927 = vmatpush3.bf16.msra.mxu0 %v2111_v58 }
 0x117   :  { %1949 = vmatpush3.bf16.msra.mxu1 %v2112_v59  ;;  %1928 = vmatprep.subr.bf16.mxu0 %v2113_v62 }
 0x118   :  { %1950 = vmatprep.subr.bf16.mxu1 %v2114_v63 }
 0x11a   :  { %1929 = vmatpush3.bf16.msra.mxu0 %v2115_v0 }
 0x11b   :  { %1951 = vmatpush3.bf16.msra.mxu1 %v2116_v1  ;;  %1958 = vmatprep.subr.bf16.mxu0 %v2117_v4 }
 0x11c   :  { %1980 = vmatprep.subr.bf16.mxu1 %v2118_v5 }
 0x11d   :  { %1525 = vmatmul.mubr.bf16.vlgmr.msra.gmra.mxu0 %v293_v7 }
 0x11e   :  { %1565 = vmatmul.mubr.bf16.vlgmr.msra.gmra.mxu1 %v295_v9  ;;  %1959 = vmatpush3.bf16.msra.mxu0 %v2119_v6 }
 0x11f   :  { %1604 = vmatprep.mubr.bf16.mxu0 %v298_v11  ;;  %1981 = vmatpush3.bf16.msra.mxu1 %v2120_v8 }
 0x120   :  { %1644 = vmatprep.mubr.bf16.mxu1 %v300_v12  ;;  %1960 = vmatprep.subr.bf16.mxu0 %v2121_v10 }
 0x121   :  { %1982 = vmatprep.subr.bf16.mxu1 %v2122_v39 }
 0x122   :  { %1961 = vmatpush3.bf16.msra.mxu0 %v2123_v41 }
 0x123   :  { %1983 = vmatpush3.bf16.msra.mxu1 %v2124_v13  ;;  %1962 = vmatprep.subr.bf16.mxu0 %v2125_v42 }
 0x124   :  { %1984 = vmatprep.subr.bf16.mxu1 %v2126_v53 }
 0x126   :  { %1963 = vmatpush3.bf16.msra.mxu0 %v2127_v14 }
 0x127   :  { %1985 = vmatpush3.bf16.msra.mxu1 %v2128_v15  ;;  %1964 = vmatprep.subr.bf16.mxu0 %v2129_v16 }
 0x128   :  { %1986 = vmatprep.subr.bf16.mxu1 %v2130_v17 }
 0x12a   :  { %1965 = vmatpush3.bf16.msra.mxu0 %v2131_v18 }
 0x12b   :  { %1987 = vmatpush3.bf16.msra.mxu1 %v2132_v19  ;;  %1966 = vmatprep.subr.bf16.mxu0 %v2133_v20 }
 0x12c   :  { %1988 = vmatprep.subr.bf16.mxu1 %v2134_v60 }
 0x12e   :  { %1967 = vmatpush3.bf16.msra.mxu0 %v2135_v61 }
 0x12f   :  { %1989 = vmatpush3.bf16.msra.mxu1 %v2136_v21  ;;  %1968 = vmatprep.subr.bf16.mxu0 %v2137_v22 }
 0x130   :  { %1990 = vmatprep.subr.bf16.mxu1 %v2138_v23 }
 0x132   :  { %1969 = vmatpush3.bf16.msra.mxu0 %v2139_v24 }
 0x133   :  { %1991 = vmatpush3.bf16.msra.mxu1 %v2140_v2  ;;  %1970 = vmatprep.subr.bf16.mxu0 %v2141_v3 }
 0x134   :  { %1992 = vmatprep.subr.bf16.mxu1 %v2142_v25 }
 0x136   :  { %1971 = vmatpush3.bf16.msra.mxu0 %v2143_v26 }
 0x137   :  { %1993 = vmatpush3.bf16.msra.mxu1 %v2144_v27  ;;  %1972 = vmatprep.subr.bf16.mxu0 %v2145_v28 }
 0x138   :  { %1994 = vmatprep.subr.bf16.mxu1 %v2146_v29 }
 0x13a   :  { %1973 = vmatpush3.bf16.msra.mxu0 %v2147_v30 }
 0x13b   :  { %1995 = vmatpush3.bf16.msra.mxu1 %v2148_v31 }
 0x13d   :  { %1605 = vmatmul.mubr.bf16.vlgmr.msra.gmra.mxu0 %v297_v32 }
 0x13e   :  { %1645 = vmatmul.mubr.bf16.vlgmr.msra.gmra.mxu1 %v299_v33 }
 0x19d   :  { %v1842_v34 = vpop.f32.mrf.mxu0  ;;  %v1864_v35 = vpop.f32.mrf.mxu1 }
 0x19f   :  { %v1843_v37 = vpop.f32.mrf.mxu0  ;;  %v1865_v38 = vpop.f32.mrf.mxu1 }
 0x1a0   :  { %v1844_v40 = vadd.f32 %v1843_v37, %v1842_v34  ;;  %v1866_v43 = vadd.f32 %v1865_v38, %v1864_v35 }
 0x1a1   :  { %v1845_v44 = vpop.f32.mrf.mxu0  ;;  %v1867_v45 = vpop.f32.mrf.mxu1 }
 0x1a2   :  { %v1367_v46 = vadd.f32 %v1844_v40, %v1697_v36 }
 0x1a3   :  { %v1846_v47 = vpop.f32.mrf.mxu0  ;;  %v1868_v54 = vpop.f32.mrf.mxu1 }
 0x1a4   :  { %v1407_v48 = vadd.f32 %v1866_v43, %v1367_v46 }
 0x1bd   :  { %v1886_v49 = vpop.f32.mrf.mxu0  ;;  %v1908_v55 = vpop.f32.mrf.mxu1 }
 0x1bf   :  { %v1887_v50 = vpop.f32.mrf.mxu0  ;;  %v1909_v51 = vpop.f32.mrf.mxu1 }
 0x1c0   :  { %v1888_v7 = vadd.f32 %v1887_v50, %v1886_v49  ;;  %v1910_v9 = vadd.f32 %v1909_v51, %v1908_v55 }
 0x1c1   :  { %v1889_v52 = vpop.f32.mrf.mxu0  ;;  %v1911_v56 = vpop.f32.mrf.mxu1 }
 0x1c2   :  { %v1447_v8 = vadd.f32 %v1888_v7, %v1407_v48 }
 0x1c3   :  { %v1890_v57 = vpop.f32.mrf.mxu0  ;;  %v1912_v58 = vpop.f32.mrf.mxu1 }
 0x1c4   :  { %v1487_v11 = vadd.f32 %v1910_v9, %v1447_v8 }
 0x1dd   :  { %v1930_v59 = vpop.f32.mrf.mxu0 }
 0x1de   :  { %v1952_v62 = vpop.f32.mrf.mxu1 }
 0x1df   :  { %v1931_v63 = vpop.f32.mrf.mxu0 }
 0x1e0   :  { %v1953_v0 = vpop.f32.mrf.mxu1  ;;  %v1932_v10 = vadd.f32 %v1931_v63, %v1930_v59 }
 0x1e1   :  { %v1933_v1 = vpop.f32.mrf.mxu0  ;;  %v1954_v41 = vadd.f32 %v1953_v0, %v1952_v62 }
 0x1e2   :  { %v1955_v4 = vpop.f32.mrf.mxu1  ;;  %v1527_v39 = vadd.f32 %v1932_v10, %v1487_v11 }
 0x1e3   :  { %v1934_v5 = vpop.f32.mrf.mxu0 }
 0x1e4   :  { %v1956_v6 = vpop.f32.mrf.mxu1  ;;  %v1567_v53 = vadd.f32 %v1954_v41, %v1527_v39 }
 0x1fd   :  { %v1974_v12 = vpop.f32.mrf.mxu0 }
 0x1fe   :  { %v1996_v13 = vpop.f32.mrf.mxu1 }
 0x1ff   :  { %v1975_v42 = vpop.f32.mrf.mxu0 }
 0x200   :  { %v1976_v14 = vadd.f32 %v1975_v42, %v1974_v12  ;;  %v1997_v15 = vpop.f32.mrf.mxu1 }
 0x201   :  { %v1977_v16 = vpop.f32.mrf.mxu0  ;;  %v1998_v18 = vadd.f32 %v1997_v15, %v1996_v13 }
 0x202   :  { %v1607_v17 = vadd.f32 %v1976_v14, %v1567_v53  ;;  %v1999_v19 = vpop.f32.mrf.mxu1 }
 0x203   :  { %v1978_v20 = vpop.f32.mrf.mxu0 }
 0x204   :  { %v1647_v60 = vadd.f32 %v1998_v18, %v1607_v17  ;;  %v2000_v61 = vpop.f32.mrf.mxu1 }
 0x206   :  { %v1652_v21 = vmax.f32 %v1647_v60, 0.0 }
 0x208   :  { %1654 = vst.msk [vmem:[#allocation2] sm:$0x3] %vm1653_vm3, %v1652_v21 }
 0x209   :  { %2160 = shalt.err (!%p2157_p4)
}
 0x20a   :  { %1664 = dma.vmem_to_hbm [thread:$0]  %s1662_s4, 32, %s2712_s5, [#allocation3]  }
 0x20b   :  { %2169 = dma.done.wait [#allocation3], 32  }
 0x20c   :  { %2170 = vsyncadd [#allocation3], 4294967264 }
 0x20d   :  { %1668 = vsyncpa [#allocation3], 1 }

</bundles_post_ra>
